<compile_context>
chip_gen: v6e
topology: v6e:2x2x1
jax: 0.10.0
libtpu: 0.0.40
codegen_flags: <defaults>
</compile_context>

<pallas_src>
import functools

import jax
import jax.numpy as jnp
from jax.experimental import pallas as pl
from jax.experimental.pallas import tpu as pltpu


def dqn_kernel(x_ref, w1_ref, b1_ref, w2_ref, b2_ref, o_ref):
    # x_ref: (TILE_B, S), w1_ref: (S, H), b1_ref: (1, H)
    # w2_ref: (H, A_pad), b2_ref: (1, A_pad), o_ref: (TILE_B, A_pad)
    x = x_ref[...]
    w1 = w1_ref[...]
    tb = x.shape[0]
    hdim = w1.shape[1]

    # Layer 1 on the VPU: K (= state_dim) is tiny, so an MXU matmul would be
    # >95% padding and still pay full MXU push/pop latency. Static unrolled
    # broadcast multiply-adds are cheaper on a latency-bound kernel.
    h = jnp.broadcast_to(b1_ref[...], (tb, hdim))
    for k in range(x.shape[1]):  # state_dim is small and static -> unrolled
        h = h + x[:, k:k + 1] * w1[k:k + 1, :]
    h = jnp.tanh(h)  # EUP

    # Layer 2 on the MXU with lane-dense (padded-to-128) output columns.
    out = jnp.dot(h, w2_ref[...], preferred_element_type=jnp.float32) + b2_ref[...]
    o_ref[...] = out.astype(o_ref.dtype)


@functools.partial(jax.jit, static_argnames=("tile_b",))
def dqn_forward(x, w1, b1, w2, b2, tile_b=256):
    B, S = x.shape
    H = w1.shape[1]
    A = w2.shape[1]
    LANE = 128

    # Lane-dense output width (zero-padded columns are inert: 0-weights, 0-bias).
    A_pad = max(LANE, ((A + LANE - 1) // LANE) * LANE)
    w2_p = jnp.pad(w2, ((0, 0), (0, A_pad - A)))
    b2_p = jnp.pad(b2, ((0, 0), (0, A_pad - A)))

    # Batch tiling: multiple of 8 sublanes, capped so VMEM stays tiny even on
    # v7x's smaller VMEM; pad the batch up to a whole number of tiles.
    tb = min(tile_b, max(8, ((B + 7) // 8) * 8))
    tb = ((tb + 7) // 8) * 8
    B_pad = ((B + tb - 1) // tb) * tb
    x_p = jnp.pad(x, ((0, B_pad - B), (0, 0)))
    n_tiles = B_pad // tb

    flops = 2 * B_pad * (S * H + H * A_pad)
    bytes_accessed = 4 * (B_pad * S + S * H + H + H * A_pad + A_pad + B_pad * A_pad)

    out = pl.pallas_call(
        dqn_kernel,
        out_shape=jax.ShapeDtypeStruct((B_pad, A_pad), jnp.float32),
        grid=(n_tiles,),
        in_specs=[
            # x: tiled over the batch.
            pl.BlockSpec((tb, S), lambda i: (i, 0),
                         memory_space=pltpu.MemorySpace.VMEM),
            # Weights/biases: constant block index -> VMEM-resident across steps.
            pl.BlockSpec((S, H), lambda i: (0, 0),
                         memory_space=pltpu.MemorySpace.VMEM),
            pl.BlockSpec((1, H), lambda i: (0, 0),
                         memory_space=pltpu.MemorySpace.VMEM),
            pl.BlockSpec((H, A_pad), lambda i: (0, 0),
                         memory_space=pltpu.MemorySpace.VMEM),
            pl.BlockSpec((1, A_pad), lambda i: (0, 0),
                         memory_space=pltpu.MemorySpace.VMEM),
        ],
        out_specs=pl.BlockSpec((tb, A_pad), lambda i: (i, 0),
                               memory_space=pltpu.MemorySpace.VMEM),
        compiler_params=pltpu.CompilerParams(
            dimension_semantics=("parallel",),  # megacore split on v7x
        ),
        cost_estimate=pl.CostEstimate(
            flops=flops,
            transcendentals=B_pad * H,
            bytes_accessed=bytes_accessed,
        ),
    )(x_p, w1, b1, w2_p, b2_p)

    # TODO(synk): fuse downstream DQN consumers (argmax / epsilon-greedy / TD error)
    # into this call to remove the padded Q-value writeback entirely.
    return out[:B, :A]


def init_dqn_params(key, state_dim, action_dim, hidden=128):
    """Deterministic init mirroring nn.Linear's U(-1/sqrt(fan_in), 1/sqrt(fan_in))."""
    k1, k2, k3, k4 = jax.random.split(key, 4)
    bound1 = 1.0 / jnp.sqrt(jnp.float32(state_dim))
    bound2 = 1.0 / jnp.sqrt(jnp.float32(hidden))
    w1 = jax.random.uniform(k1, (state_dim, hidden), jnp.float32, -bound1, bound1)
    b1 = jax.random.uniform(k2, (1, hidden), jnp.float32, -bound1, bound1)
    w2 = jax.random.uniform(k3, (hidden, action_dim), jnp.float32, -bound2, bound2)
    b2 = jax.random.uniform(k4, (1, action_dim), jnp.float32, -bound2, bound2)
    return w1, b1, w2, b2


if __name__ == "__main__":
    # DQN over a simple gym env: state_space_dim=(4,), action_space_dim=2 (CartPole-like).
    B, STATE_DIM, ACTION_DIM = 8, 4, 2

    key = jax.random.PRNGKey(0)
    key_x, key_p = jax.random.split(key)
    x = jax.random.normal(key_x, (B, STATE_DIM), jnp.float32)
    w1, b1, w2, b2 = init_dqn_params(key_p, STATE_DIM, ACTION_DIM)

    out = dqn_forward(x, w1, b1, w2, b2)
    jax.block_until_ready(out)

    # Pure-JAX reference check of the forward-pass semantics.
    ref = jnp.tanh(x @ w1 + b1) @ w2 + b2
    assert out.shape == (B, ACTION_DIM)
    assert jnp.allclose(out, ref, atol=1e-5, rtol=1e-5)

    # Also exercise a larger, multi-tile batch to validate the parallel grid path.
    big_B = 1024
    xb = jax.random.normal(key_x, (big_B, STATE_DIM), jnp.float32)
    out_b = dqn_forward(xb, w1, b1, w2, b2)
    jax.block_until_ready(out_b)
    ref_b = jnp.tanh(xb @ w1 + b1) @ w2 + b2
    assert out_b.shape == (big_B, ACTION_DIM)
    assert jnp.allclose(out_b, ref_b, atol=1e-5, rtol=1e-5)

    print("KERNEL_OK")
</pallas_src>

<mosaic_0001>
module attributes {stable_mosaic.version = 11 : i64} {
  func.func @dqn_kernel(%arg0: i32, %arg1: memref<8x4xf32, #tpu.memory_space<vmem>>, %arg2: memref<4x128xf32, #tpu.memory_space<vmem>>, %arg3: memref<1x128xf32, #tpu.memory_space<vmem>>, %arg4: memref<128x128xf32, #tpu.memory_space<vmem>>, %arg5: memref<1x128xf32, #tpu.memory_space<vmem>>, %arg6: memref<8x128xf32, #tpu.memory_space<vmem>>) attributes {dimension_semantics = [#tpu.dimension_semantics<parallel>], iteration_bounds = array<i64: 1>, scalar_prefetch = 0 : i64, scratch_operands = 0 : i64, tpu.core_type = #tpu.core_type<tc>, window_params = [{transform_indices = @transform_0, window_bounds = array<i64: 8, 4>}, {pipeline_mode = #tpu.pipeline_mode<synchronous>, transform_indices = @transform_1, window_bounds = array<i64: 4, 128>}, {pipeline_mode = #tpu.pipeline_mode<synchronous>, transform_indices = @transform_2, window_bounds = array<i64: 1, 128>}, {pipeline_mode = #tpu.pipeline_mode<synchronous>, transform_indices = @transform_3, window_bounds = array<i64: 128, 128>}, {pipeline_mode = #tpu.pipeline_mode<synchronous>, transform_indices = @transform_4, window_bounds = array<i64: 1, 128>}, {transform_indices = @transform_5, window_bounds = array<i64: 8, 128>}]} {
    %c0 = arith.constant 0 : index
    %c0_0 = arith.constant 0 : index
    %0 = vector.load %arg1[%c0, %c0_0] : memref<8x4xf32, #tpu.memory_space<vmem>>, vector<8x4xf32>
    %c0_1 = arith.constant 0 : index
    %c0_2 = arith.constant 0 : index
    %1 = vector.load %arg2[%c0_1, %c0_2] : memref<4x128xf32, #tpu.memory_space<vmem>>, vector<4x128xf32>
    %c0_3 = arith.constant 0 : index
    %c0_4 = arith.constant 0 : index
    %2 = vector.load %arg3[%c0_3, %c0_4] : memref<1x128xf32, #tpu.memory_space<vmem>>, vector<1x128xf32>
    %3 = vector.shape_cast %2 : vector<1x128xf32> to vector<1x128xf32>
    %4 = vector.broadcast %3 : vector<1x128xf32> to vector<8x128xf32>
    %5 = vector.extract_strided_slice %0 {offsets = [0, 0], sizes = [8, 1], strides = [1, 1]} : vector<8x4xf32> to vector<8x1xf32>
    %6 = vector.extract_strided_slice %1 {offsets = [0, 0], sizes = [1, 128], strides = [1, 1]} : vector<4x128xf32> to vector<1x128xf32>
    %7 = vector.broadcast %5 : vector<8x1xf32> to vector<8x128xf32>
    %8 = vector.broadcast %6 : vector<1x128xf32> to vector<8x128xf32>
    %9 = arith.mulf %7, %8 : vector<8x128xf32>
    %10 = arith.addf %4, %9 : vector<8x128xf32>
    %11 = vector.extract_strided_slice %0 {offsets = [0, 1], sizes = [8, 1], strides = [1, 1]} : vector<8x4xf32> to vector<8x1xf32>
    %12 = vector.extract_strided_slice %1 {offsets = [1, 0], sizes = [1, 128], strides = [1, 1]} : vector<4x128xf32> to vector<1x128xf32>
    %13 = vector.broadcast %11 : vector<8x1xf32> to vector<8x128xf32>
    %14 = vector.broadcast %12 : vector<1x128xf32> to vector<8x128xf32>
    %15 = arith.mulf %13, %14 : vector<8x128xf32>
    %16 = arith.addf %10, %15 : vector<8x128xf32>
    %17 = vector.extract_strided_slice %0 {offsets = [0, 2], sizes = [8, 1], strides = [1, 1]} : vector<8x4xf32> to vector<8x1xf32>
    %18 = vector.extract_strided_slice %1 {offsets = [2, 0], sizes = [1, 128], strides = [1, 1]} : vector<4x128xf32> to vector<1x128xf32>
    %19 = vector.broadcast %17 : vector<8x1xf32> to vector<8x128xf32>
    %20 = vector.broadcast %18 : vector<1x128xf32> to vector<8x128xf32>
    %21 = arith.mulf %19, %20 : vector<8x128xf32>
    %22 = arith.addf %16, %21 : vector<8x128xf32>
    %23 = vector.extract_strided_slice %0 {offsets = [0, 3], sizes = [8, 1], strides = [1, 1]} : vector<8x4xf32> to vector<8x1xf32>
    %24 = vector.extract_strided_slice %1 {offsets = [3, 0], sizes = [1, 128], strides = [1, 1]} : vector<4x128xf32> to vector<1x128xf32>
    %25 = vector.broadcast %23 : vector<8x1xf32> to vector<8x128xf32>
    %26 = vector.broadcast %24 : vector<1x128xf32> to vector<8x128xf32>
    %27 = arith.mulf %25, %26 : vector<8x128xf32>
    %28 = arith.addf %22, %27 : vector<8x128xf32>
    %29 = math.tanh %28 : vector<8x128xf32>
    %c0_5 = arith.constant 0 : index
    %c0_6 = arith.constant 0 : index
    %30 = vector.load %arg4[%c0_5, %c0_6] : memref<128x128xf32, #tpu.memory_space<vmem>>, vector<128x128xf32>
    %cst = arith.constant dense<0.000000e+00> : vector<8x128xf32>
    %31 = tpu.matmul %29, %30, %cst {dimension_numbers = #tpu.dot_dimension_numbers<[1], [0], [0], [1], [0, 0, 1, 1], [], []>} : vector<8x128xf32>, vector<128x128xf32>, vector<8x128xf32> -> vector<8x128xf32>
    %c0_7 = arith.constant 0 : index
    %c0_8 = arith.constant 0 : index
    %32 = vector.load %arg5[%c0_7, %c0_8] : memref<1x128xf32, #tpu.memory_space<vmem>>, vector<1x128xf32>
    %33 = vector.broadcast %32 : vector<1x128xf32> to vector<8x128xf32>
    %34 = arith.addf %31, %33 : vector<8x128xf32>
    %c0_9 = arith.constant 0 : index
    %c0_10 = arith.constant 0 : index
    %35 = vector.load %arg6[%c0_9, %c0_10] : memref<8x128xf32, #tpu.memory_space<vmem>>, vector<8x128xf32>
    tpu.vector_store %arg6[%c0_9, %c0_10], %34 {strides = array<i32>} : memref<8x128xf32, #tpu.memory_space<vmem>>, vector<8x128xf32>,
    return
  }
  func.func @transform_0(%arg0: i32) -> (i32, i32) {
    %c0_i32 = arith.constant 0 : i32
    %c0_i32_0 = arith.constant 0 : i32
    return %arg0, %c0_i32 : i32, i32
  }
  func.func @transform_1(%arg0: i32) -> (i32, i32) {
    %c0_i32 = arith.constant 0 : i32
    %c0_i32_0 = arith.constant 0 : i32
    %c0_i32_1 = arith.constant 0 : i32
    return %c0_i32, %c0_i32_0 : i32, i32
  }
  func.func @transform_2(%arg0: i32) -> (i32, i32) {
    %c0_i32 = arith.constant 0 : i32
    %c0_i32_0 = arith.constant 0 : i32
    %c0_i32_1 = arith.constant 0 : i32
    return %c0_i32, %c0_i32_0 : i32, i32
  }
  func.func @transform_3(%arg0: i32) -> (i32, i32) {
    %c0_i32 = arith.constant 0 : i32
    %c0_i32_0 = arith.constant 0 : i32
    %c0_i32_1 = arith.constant 0 : i32
    return %c0_i32, %c0_i32_0 : i32, i32
  }
  func.func @transform_4(%arg0: i32) -> (i32, i32) {
    %c0_i32 = arith.constant 0 : i32
    %c0_i32_0 = arith.constant 0 : i32
    %c0_i32_1 = arith.constant 0 : i32
    return %c0_i32, %c0_i32_0 : i32, i32
  }
  func.func @transform_5(%arg0: i32) -> (i32, i32) {
    %c0_i32 = arith.constant 0 : i32
    %c0_i32_0 = arith.constant 0 : i32
    return %arg0, %c0_i32 : i32, i32
  }
}

</mosaic_0001>

<bundles_post_ra>
// kernel: dqn_forward.1
= control target key start
LH: loop header
LB: loop body
LE: loop exit
PB: predicated region body
PF: predicated region fallthrough
CT: control target
= control target key end

     0   :  { %v236_v0 = vmov 0   ;;  %v237_v2 = vmov 2   ;;  %v238_v4 = vmov 0.0   ;;  %v239_v6 = vmov 1   ;;  %s335_s0 = inlined_call_operand.vmem [shape: f32[8,4], index: 0, kind: input, shape index: {}]   ;;  %s336_s3 = inlined_call_operand.vmem [shape: f32[128,128], index: 3, kind: input, shape index: {}]   ;;  %s337_s1 = inlined_call_operand.vmem [shape: f32[4,128], index: 1, kind: input, shape index: {}]   ;;  %s338_s2 = inlined_call_operand.vmem [shape: f32[1,128], index: 2, kind: input, shape index: {}]   ;;  %s339_s4 = inlined_call_operand.vmem [shape: f32[1,128], index: 4, kind: input, shape index: {}]   ;;  %s340_s5 = inlined_call_operand.vmem [shape: f32[8,128], index: 5, kind: output, shape index: {}]  }
   0x1   :  { %229 = vset.pattern.permute.xlu0 %v236_v0  ;;  %v20_v1 = vld [vmem:[%s335_s0] sm:$0xff]  ;;  %231 = vset.pattern.permute.xlu1 %v237_v2  ;;  %v86_v3 = vld [vmem:[%s336_s3 + $0x78] sm:$0xff]  ;;  %v85_v5 = vld [vmem:[%s336_s3 + $0x70] sm:$0xff]  ;;  %v240_v7 = vmov 3   ;;  %vm241_vm0 = vmmov 0   ;;  %v34_v22 = vlaneseq }
   0x2   :  { %31 = vperm.xlu0 %229, %v20_v1   ;;  %51 = vperm.xlu1 %231, %v20_v1   ;;  %v84_v8 = vld [vmem:[%s336_s3 + $0x68] sm:$0xff]  ;;  %v83_v9 = vld [vmem:[%s336_s3 + $0x60] sm:$0xff]  ;;  %v82_v10 = vld [vmem:[%s336_s3 + $0x58] sm:$0xff] }
   0x3   :  { %188 = vmatprep.subr.mxu0 %v238_v4  ;;  %220 = vmatprep.mubr.msk.f32.mxu0 %vm241_vm0, %v238_v4  ;;  %v81_v11 = vld [vmem:[%s336_s3 + $0x50] sm:$0xff]  ;;  %v80_v12 = vld [vmem:[%s336_s3 + $0x48] sm:$0xff]  ;;  %v79_v13 = vld [vmem:[%s336_s3 + $0x40] sm:$0xff]  ;;  %v35_v23 = vshrl.u32 %v34_v22, 7 }
   0x4   :  { %189 = vmatpush3.msra.mxu0 %v86_v3  ;;  %v78_v14 = vld [vmem:[%s336_s3 + $0x38] sm:$0xff]  ;;  %v77_v15 = vld [vmem:[%s336_s3 + $0x30] sm:$0xff]  ;;  %v76_v16 = vld [vmem:[%s336_s3 + $0x28] sm:$0xff] }
   0x5   :  { %190 = vmatprep.subr.mxu0 %v238_v4  ;;  %v75_v17 = vld [vmem:[%s336_s3 + $0x20] sm:$0xff]  ;;  %v74_v18 = vld [vmem:[%s336_s3 + $0x18] sm:$0xff]  ;;  %v73_v19 = vld [vmem:[%s336_s3 + $0x10] sm:$0xff]  ;;  %v36_v24 = vsub.s32 0, %v35_v23  ;;  %v46_v27 = vsub.s32 1, %v35_v23  ;;  %v56_v29 = vsub.s32 2, %v35_v23 }
   0x6   :  { %230 = vset.pattern.permute.xlu0 %v239_v6  ;;  %232 = vset.pattern.permute.xlu1 %v240_v7  ;;  %v72_v20 = vld [vmem:[%s336_s3 + $0x8] sm:$0xff]  ;;  %v71_v21 = vld [vmem:[%s336_s3] sm:$0xff]  ;;  %v66_v31 = vsub.s32 3, %v35_v23 }
   0x7   :  { %41 = vperm.xlu0 %230, %v20_v1   ;;  %61 = vperm.xlu1 %232, %v20_v1   ;;  %v21_v25 = vld [vmem:[%s337_s1] sm:$0xf] }
   0x8   :  { %191 = vmatpush3.msra.mxu0 %v85_v5  ;;  %v37_v26 = vrot.slane %v21_v25, %v36_v24  ;;  %v47_v33 = vrot.slane %v21_v25, %v46_v27  ;;  %v169_v34 = vld [vmem:[%s338_s2] ss:$0 sm:$0xff]  ;;  %v57_v35 = vrot.slane %v21_v25, %v56_v29  ;;  %v67_v36 = vrot.slane %v21_v25, %v66_v31 }
   0x9   :  { %192 = vmatprep.subr.mxu0 %v238_v4  ;;  %v170_v47 = vld [vmem:[%s339_s4] ss:$0 sm:$0xff] }
   0xa   :  { %193 = vmatpush3.msra.mxu0 %v84_v8 }
   0xb   :  { %194 = vmatprep.subr.mxu0 %v238_v4  ;;  %233 = vset.pattern.permute.xlu0 %v240_v7 }
   0xc   :  { %195 = vmatpush3.msra.mxu0 %v83_v9 }
   0xd   :  { %196 = vmatprep.subr.mxu0 %v238_v4 }
   0xe   :  { %197 = vmatpush3.msra.mxu0 %v82_v10 }
   0xf   :  { %198 = vmatprep.subr.mxu0 %v238_v4 }
  0x10   :  { %199 = vmatpush3.msra.mxu0 %v81_v11 }
  0x11   :  { %200 = vmatprep.subr.mxu0 %v238_v4 }
  0x12   :  { %201 = vmatpush3.msra.mxu0 %v80_v12 }
  0x13   :  { %202 = vmatprep.subr.mxu0 %v238_v4 }
  0x14   :  { %203 = vmatpush3.msra.mxu0 %v79_v13 }
  0x15   :  { %204 = vmatprep.subr.mxu0 %v238_v4 }
  0x16   :  { %205 = vmatpush3.msra.mxu0 %v78_v14 }
  0x17   :  { %206 = vmatprep.subr.mxu0 %v238_v4 }
  0x18   :  { %207 = vmatpush3.msra.mxu0 %v77_v15 }
  0x19   :  { %208 = vmatprep.subr.mxu0 %v238_v4 }
  0x1a   :  { %209 = vmatpush3.msra.mxu0 %v76_v16 }
  0x1b   :  { %210 = vmatprep.subr.mxu0 %v238_v4 }
  0x1c   :  { %211 = vmatpush3.msra.mxu0 %v75_v17 }
  0x1d   :  { %212 = vmatprep.subr.mxu0 %v238_v4 }
  0x1e   :  { %213 = vmatpush3.msra.mxu0 %v74_v18 }
  0x1f   :  { %214 = vmatprep.subr.mxu0 %v238_v4 }
  0x20   :  { %215 = vmatpush3.msra.mxu0 %v73_v19 }
  0x21   :  { %216 = vmatprep.subr.mxu0 %v238_v4 }
  0x22   :  { %217 = vmatpush3.msra.mxu0 %v72_v20 }
  0x23   :  { %218 = vmatprep.subr.mxu0 %v238_v4 }
  0x24   :  { %219 = vmatpush3.msra.mxu0 %v71_v21 }
  0x7d   :  { %v32_v28 = vpop.permute.xlu0 %31  ;;  %v52_v30 = vpop.permute.xlu1 %51 }
  0x7e   :  { %v38_v32 = vmul.f32 %v37_v26, %v32_v28  ;;  %v58_v41 = vmul.f32 %v57_v35, %v52_v30 }
  0x80   :  { %v39_v39 = vadd.f32 %v169_v34, %v38_v32 }
  0x82   :  { %v42_v37 = vpop.permute.xlu0 %41  ;;  %v62_v38 = vpop.permute.xlu1 %61 }
  0x83   :  { %v48_v40 = vmul.f32 %v47_v33, %v42_v37  ;;  %v68_v43 = vmul.f32 %v67_v36, %v62_v38 }
  0x85   :  { %v49_v42 = vadd.f32 %v48_v40, %v39_v39 }
  0x87   :  { %v59_v44 = vadd.f32 %v58_v41, %v49_v42 }
  0x89   :  { %v69_v45 = vadd.f32 %v68_v43, %v59_v44 }
  0x8b   :  { %234 = vtanh.f32 %v69_v45 }
  0x98   :  { %v235_v46 = vpop.eup %234 }
  0x99   :  { %221 = vmatmul.mubr.f32.vlgmr.msra.gmra.mxu0 %v235_v46 }
 0x159   :  { %v160_v48 = vpop.f32.mrf.mxu0 }
 0x15a   :  { %v161_v49 = vadd.f32 %v170_v47, %v160_v48 }
 0x15b   :  { %v222_v50 = vpop.f32.mrf.mxu0 }
 0x15c   :  { %164 = vst [vmem:[%s340_s5] sm:$0xff] %v161_v49 }

</bundles_post_ra>
